<compile_context>
chip_gen: v6e
topology: v6e:2x2x1
jax: 0.10.0
libtpu: 0.0.40
codegen_flags: <defaults>
</compile_context>

<pallas_src>
import jax
import jax.numpy as jnp
from jax.experimental import pallas as pl
from jax.experimental.pallas import tpu as pltpu


# ----------------------------------------------------------------------------
# Kernel: d = xe @ w_e + xf @ w_f + b ;  p0 = sigmoid(d)   (lane-dense [tb,1])
# ----------------------------------------------------------------------------
def _ef_discriminator_kernel(xe_ref, xf_ref, we_ref, wf_ref, b_ref, out_ref):
    d = (jnp.dot(xe_ref[...], we_ref[...], preferred_element_type=jnp.float32)
         + jnp.dot(xf_ref[...], wf_ref[...], preferred_element_type=jnp.float32)
         + b_ref[...])
    out_ref[...] = 1.0 / (1.0 + jnp.exp(-d))


# ----------------------------------------------------------------------------
# Wrapper: two input streams, batch-tiled grid, resident folded weights.
# ----------------------------------------------------------------------------
def _round_down(x, m):
    return (x // m) * m


def _choose_tile(b, block_b):
    if b <= 1024:
        return b                                   # one block, full batch
    # 128-row aligned, capped at block_b, floored so the grid keeps >= ~8
    # steps (>= 4 per TensorCore on v7x for megacore sharding + pipelining).
    tb = max(128, _round_down(pl.cdiv(b, 8), 128))
    return min(block_b, tb)


def ef_discriminator_forward(xe, xf, folded_params, *, block_b=32768):
    w_e, w_f, b_d = folded_params                  # [De,1], [Df,1], [1,1]
    b = xe.shape[0]
    de, df = xe.shape[1], xf.shape[1]

    xe = xe.astype(jnp.float32)
    xf = xf.astype(jnp.float32)

    tb = _choose_tile(b, block_b)
    grid = (pl.cdiv(b, tb),)                       # ragged tail handled by Pallas

    p0 = pl.pallas_call(
        _ef_discriminator_kernel,
        out_shape=jax.ShapeDtypeStruct((b, 1), jnp.float32),
        grid_spec=pltpu.PrefetchScalarGridSpec(
            num_scalar_prefetch=0,
            grid=grid,
            in_specs=[
                pl.BlockSpec((tb, de), lambda i: (i, 0)),   # batch-tiled xe
                pl.BlockSpec((tb, df), lambda i: (i, 0)),   # batch-tiled xf
                pl.BlockSpec((de, 1), lambda i: (0, 0)),    # resident w_e
                pl.BlockSpec((df, 1), lambda i: (0, 0)),    # resident w_f
                pl.BlockSpec((1, 1), lambda i: (0, 0)),     # resident bias
            ],
            out_specs=pl.BlockSpec((tb, 1), lambda i: (i, 0)),
        ),
        compiler_params=pltpu.CompilerParams(
            dimension_semantics=("parallel",)),             # 2 TCs on v7x
    )(xe, xf, w_e, w_f, b_d)

    # softmax([l0, l1]) == [sigmoid(d), 1 - sigmoid(d)]  (exact, rows sum to 1)
    return jnp.concatenate([p0, 1.0 - p0], axis=1)


# ----------------------------------------------------------------------------
# Parameter construction (PyTorch nn.Linear-style init) and network folding.
# ----------------------------------------------------------------------------
def _torch_linear_init(key, fan_in, fan_out):
    """W, b ~ U(-1/sqrt(fan_in), 1/sqrt(fan_in)); stored as [in, out]."""
    kw, kb = jax.random.split(key)
    bound = 1.0 / jnp.sqrt(jnp.float32(fan_in))
    w = jax.random.uniform(kw, (fan_in, fan_out), jnp.float32, -bound, bound)
    bb = jax.random.uniform(kb, (1, fan_out), jnp.float32, -bound, bound)
    return w, bb


def make_raw_params(key, input_dim_e, input_dim_f, hidden_dim_1=32, hidden_dim_2=16):
    k1, k2, k3, k4 = jax.random.split(key, 4)
    we, be = _torch_linear_init(k1, input_dim_e, hidden_dim_1)
    wf, bf = _torch_linear_init(k2, input_dim_f, hidden_dim_1)
    w3, b3 = _torch_linear_init(k3, hidden_dim_1 * 2, hidden_dim_2)
    w4, b4 = _torch_linear_init(k4, hidden_dim_2, 2)
    return (we, be, wf, bf, w3, b3, w4, b4)


def fold_params(raw_params):
    """Fold the activation-free chain fce/fcf -> cat -> fc3 -> fc4 into one
    affine map and keep only the logit-difference column d = l0 - l1, so the
    kernel computes sigmoid(d) = softmax(...)[:, 0] exactly.
    NOTE: exact only because the module has no nonlinearity before Softmax."""
    we, be, wf, bf, w3, b3, w4, b4 = raw_params
    h1 = we.shape[1]
    w3e, w3f = w3[:h1], w3[h1:]
    w_e_full = we @ w3e @ w4                                  # [De, 2]
    w_f_full = wf @ w3f @ w4                                  # [Df, 2]
    b_full = (be @ w3e + bf @ w3f + b3) @ w4 + b4             # [1, 2]
    w_e = w_e_full[:, 0:1] - w_e_full[:, 1:2]                 # [De, 1]
    w_f = w_f_full[:, 0:1] - w_f_full[:, 1:2]                 # [Df, 1]
    b_d = b_full[:, 0:1] - b_full[:, 1:2]                     # [1, 1]
    return w_e, w_f, b_d


def reference_forward(xe, xf, raw_params):
    """Pure-JAX reference with the PyTorch module's exact structure."""
    we, be, wf, bf, w3, b3, w4, b4 = raw_params
    he = xe @ we + be
    hf = xf @ wf + bf
    x = jnp.concatenate([he, hf], axis=1)
    h3 = x @ w3 + b3
    h4 = h3 @ w4 + b4
    return jax.nn.softmax(h4, axis=1)


# ----------------------------------------------------------------------------
if __name__ == "__main__":
    input_dim_e, input_dim_f = 12, 20
    hidden_dim_1, hidden_dim_2 = 32, 16

    key = jax.random.PRNGKey(0)
    k_xe, k_xf, k_p, k_xe2, k_xf2 = jax.random.split(key, 5)

    raw = make_raw_params(k_p, input_dim_e, input_dim_f, hidden_dim_1, hidden_dim_2)
    folded = fold_params(raw)

    # --- small-batch check (single grid step, f32, strict tolerance) -------
    B = 8
    xe = jax.random.normal(k_xe, (B, input_dim_e), jnp.float32)
    xf = jax.random.normal(k_xf, (B, input_dim_f), jnp.float32)
    out = jax.block_until_ready(ef_discriminator_forward(xe, xf, folded))
    ref = reference_forward(xe, xf, raw)
    assert out.shape == (B, 2)
    assert jnp.allclose(out, ref, atol=1e-5, rtol=1e-5), "mismatch vs JAX reference (small)"
    assert jnp.allclose(jnp.sum(out, axis=1), 1.0, atol=1e-6), "rows must sum to 1"

    # --- larger batch: exercises the tiled grid and the ragged tail block ---
    B2 = 1040                      # > 1024 -> tb = 128, grid = 9 (tail of 16 rows)
    xe2 = jax.random.normal(k_xe2, (B2, input_dim_e), jnp.float32)
    xf2 = jax.random.normal(k_xf2, (B2, input_dim_f), jnp.float32)
    out2 = jax.block_until_ready(ef_discriminator_forward(xe2, xf2, folded))
    ref2 = reference_forward(xe2, xf2, raw)
    assert out2.shape == (B2, 2)
    assert jnp.allclose(out2, ref2, atol=1e-4, rtol=1e-4), "mismatch vs JAX reference (tiled)"
    assert jnp.allclose(jnp.sum(out2, axis=1), 1.0, atol=1e-6), "rows must sum to 1 (tiled)"

    print("KERNEL_OK")
</pallas_src>

<mosaic_0001>
module attributes {stable_mosaic.version = 11 : i64} {
  func.func @_ef_discriminator_kernel(%arg0: i32, %arg1: memref<8x12xf32, #tpu.memory_space<vmem>>, %arg2: memref<8x20xf32, #tpu.memory_space<vmem>>, %arg3: memref<12x1xf32, #tpu.memory_space<vmem>>, %arg4: memref<20x1xf32, #tpu.memory_space<vmem>>, %arg5: memref<1x1xf32, #tpu.memory_space<vmem>>, %arg6: memref<8x1xf32, #tpu.memory_space<vmem>>) attributes {dimension_semantics = [#tpu.dimension_semantics<parallel>], iteration_bounds = array<i64: 1>, scalar_prefetch = 0 : i64, scratch_operands = 0 : i64, tpu.core_type = #tpu.core_type<tc>, window_params = [{transform_indices = @transform_0, window_bounds = array<i64: 8, 12>}, {transform_indices = @transform_1, window_bounds = array<i64: 8, 20>}, {pipeline_mode = #tpu.pipeline_mode<synchronous>, transform_indices = @transform_2, window_bounds = array<i64: 12, 1>}, {pipeline_mode = #tpu.pipeline_mode<synchronous>, transform_indices = @transform_3, window_bounds = array<i64: 20, 1>}, {pipeline_mode = #tpu.pipeline_mode<synchronous>, transform_indices = @transform_4, window_bounds = array<i64: 1, 1>}, {transform_indices = @transform_5, window_bounds = array<i64: 8, 1>}]} {
    %c0 = arith.constant 0 : index
    %c0_0 = arith.constant 0 : index
    %0 = vector.load %arg1[%c0, %c0_0] : memref<8x12xf32, #tpu.memory_space<vmem>>, vector<8x12xf32>
    %c0_1 = arith.constant 0 : index
    %c0_2 = arith.constant 0 : index
    %1 = vector.load %arg3[%c0_1, %c0_2] : memref<12x1xf32, #tpu.memory_space<vmem>>, vector<12x1xf32>
    %cst = arith.constant dense<0.000000e+00> : vector<8x1xf32>
    %2 = tpu.matmul %0, %1, %cst {dimension_numbers = #tpu.dot_dimension_numbers<[1], [0], [0], [1], [0, 0, 1, 1], [], []>} : vector<8x12xf32>, vector<12x1xf32>, vector<8x1xf32> -> vector<8x1xf32>
    %c0_3 = arith.constant 0 : index
    %c0_4 = arith.constant 0 : index
    %3 = vector.load %arg2[%c0_3, %c0_4] : memref<8x20xf32, #tpu.memory_space<vmem>>, vector<8x20xf32>
    %c0_5 = arith.constant 0 : index
    %c0_6 = arith.constant 0 : index
    %4 = vector.load %arg4[%c0_5, %c0_6] : memref<20x1xf32, #tpu.memory_space<vmem>>, vector<20x1xf32>
    %cst_7 = arith.constant dense<0.000000e+00> : vector<8x1xf32>
    %5 = tpu.matmul %3, %4, %cst_7 {dimension_numbers = #tpu.dot_dimension_numbers<[1], [0], [0], [1], [0, 0, 1, 1], [], []>} : vector<8x20xf32>, vector<20x1xf32>, vector<8x1xf32> -> vector<8x1xf32>
    %6 = arith.addf %2, %5 : vector<8x1xf32>
    %c0_8 = arith.constant 0 : index
    %c0_9 = arith.constant 0 : index
    %7 = vector.load %arg5[%c0_8, %c0_9] : memref<1x1xf32, #tpu.memory_space<vmem>>, vector<1x1xf32>
    %8 = vector.broadcast %7 : vector<1x1xf32> to vector<8x1xf32>
    %9 = arith.addf %6, %8 : vector<8x1xf32>
    %cst_10 = arith.constant 0.000000e+00 : f32
    %10 = vector.broadcast %cst_10 : f32 to vector<8x1xf32>
    %11 = arith.subf %10, %9 : vector<8x1xf32>
    %12 = math.exp %11 : vector<8x1xf32>
    %cst_11 = arith.constant 1.000000e+00 : f32
    %13 = vector.broadcast %cst_11 : f32 to vector<8x1xf32>
    %14 = arith.addf %13, %12 : vector<8x1xf32>
    %cst_12 = arith.constant 1.000000e+00 : f32
    %15 = vector.broadcast %cst_12 : f32 to vector<8x1xf32>
    %16 = arith.divf %15, %14 : vector<8x1xf32>
    %c0_13 = arith.constant 0 : index
    %c0_14 = arith.constant 0 : index
    %17 = vector.load %arg6[%c0_13, %c0_14] : memref<8x1xf32, #tpu.memory_space<vmem>>, vector<8x1xf32>
    tpu.vector_store %arg6[%c0_13, %c0_14], %16 {strides = array<i32>} : memref<8x1xf32, #tpu.memory_space<vmem>>, vector<8x1xf32>,
    return
  }
  func.func @transform_0(%arg0: i32) -> (i32, i32) {
    %c0_i32 = arith.constant 0 : i32
    %c0_i32_0 = arith.constant 0 : i32
    return %arg0, %c0_i32 : i32, i32
  }
  func.func @transform_1(%arg0: i32) -> (i32, i32) {
    %c0_i32 = arith.constant 0 : i32
    %c0_i32_0 = arith.constant 0 : i32
    return %arg0, %c0_i32 : i32, i32
  }
  func.func @transform_2(%arg0: i32) -> (i32, i32) {
    %c0_i32 = arith.constant 0 : i32
    %c0_i32_0 = arith.constant 0 : i32
    %c0_i32_1 = arith.constant 0 : i32
    return %c0_i32, %c0_i32_0 : i32, i32
  }
  func.func @transform_3(%arg0: i32) -> (i32, i32) {
    %c0_i32 = arith.constant 0 : i32
    %c0_i32_0 = arith.constant 0 : i32
    %c0_i32_1 = arith.constant 0 : i32
    return %c0_i32, %c0_i32_0 : i32, i32
  }
  func.func @transform_4(%arg0: i32) -> (i32, i32) {
    %c0_i32 = arith.constant 0 : i32
    %c0_i32_0 = arith.constant 0 : i32
    %c0_i32_1 = arith.constant 0 : i32
    return %c0_i32, %c0_i32_0 : i32, i32
  }
  func.func @transform_5(%arg0: i32) -> (i32, i32) {
    %c0_i32 = arith.constant 0 : i32
    %c0_i32_0 = arith.constant 0 : i32
    return %arg0, %c0_i32 : i32, i32
  }
}

</mosaic_0001>

<bundles_post_ra>
// kernel: tpu_custom_call.1
= control target key start
LH: loop header
LB: loop body
LE: loop exit
PB: predicated region body
PF: predicated region fallthrough
CT: control target
= control target key end

     0   :  { %vm33_vm0 = vcmask 1043456   ;;  %v238_v0 = vmov 0.0   ;;  %vm107_vm1 = vcmask 97280   ;;  %vm239_vm2 = vmmov 0   ;;  %s297_s3 = inlined_call_operand.vmem [shape: f32[20,1], index: 3, kind: input, shape index: {}]   ;;  %s298_s2 = inlined_call_operand.vmem [shape: f32[12,1], index: 2, kind: input, shape index: {}]   ;;  %s299_s0 = inlined_call_operand.vmem [shape: f32[8,12], index: 0, kind: input, shape index: {}]   ;;  %s300_s1 = inlined_call_operand.vmem [shape: f32[8,20], index: 1, kind: input, shape index: {}]   ;;  %s301_s4 = inlined_call_operand.<no memory space> [shape: f32[1,1], index: 4, kind: input, shape index: {}]   ;;  %s302_s5 = inlined_call_operand.vmem [shape: f32[8,1], index: 5, kind: output, shape index: {}]  }
   0x1   :  { %216 = vmatprep.subr.mxu0 %v238_v0  ;;  %225 = vmatprep.subr.mxu1 %v238_v0  ;;  %v28_v1 = vld [vmem:[%s297_s3 + $0x10] sm:$0xf]  ;;  %v24_v2 = vld [vmem:[%s298_s2 + $0x8] sm:$0xf]  ;;  %v23_v4 = vld [vmem:[%s298_s2] sm:$0xff]  ;;  %vm29_vm3 = vcmask 162816   ;;  %v10_v8 = vstv %s301_s4 }
   0x2   :  { %v27_v3 = vld [vmem:[%s297_s3 + $0x8] sm:$0xff]  ;;  %217 = vmatpush3.msk.msra.mxu0 %vm33_vm0, %v28_v1  ;;  %226 = vmatpush3.msk.msra.mxu1 %vm33_vm0, %v24_v2  ;;  %v22_v5 = vld [vmem:[%s299_s0] sm:$0xff]  ;;  %11 = vst [vmem:[#allocation2] sm:$0x1] %v10_v8  ;;  %vm198_vm4 = vcmask 7168  }
   0x3   :  { %218 = vmatprep.subr.mxu0 %v238_v0  ;;  %227 = vmatprep.subr.mxu1 %v238_v0  ;;  %v26_v6 = vld [vmem:[%s297_s3] sm:$0xff] }
   0x4   :  { %219 = vmatpush3.msra.mxu0 %v27_v3  ;;  %228 = vmatpush3.msra.mxu1 %v23_v4  ;;  %v25_v7 = vld [vmem:[%s300_s1] sm:$0xff] }
   0x5   :  { %229 = vmatprep.mubr.msk.f32.mxu1 %vm239_vm2, %v238_v0  ;;  %220 = vmatprep.subr.mxu0 %v238_v0 }
   0x6   :  { %230 = vmatmul.mubr.msk.f32.vlgmr.msra.gmra.mxu1 %vm107_vm1, %v22_v5  ;;  %221 = vmatpush3.msra.mxu0 %v26_v6 }
   0x7   :  { %222 = vmatprep.mubr.msk.f32.mxu0 %vm239_vm2, %v238_v0 }
   0x8   :  { %223 = vmatmul.mubr.msk.f32.vlgmr.msra.gmra.mxu0 %vm29_vm3, %v25_v7 }
   0x9   :  { %v208_v11 = vld [vmem:[#allocation2] ss:$0 sm:$0xff] }
  0xc6   :  { %v180_v9 = vpop.f32.mrf.mxu1 }
  0xc8   :  { %v103_v10 = vpop.f32.mrf.mxu0  ;;  %v231_v12 = vpop.f32.mrf.mxu1 }
  0xc9   :  { %v181_v13 = vadd.f32 %v180_v9, %v103_v10 }
  0xca   :  { %v224_v14 = vpop.f32.mrf.mxu0 }
  0xcb   :  { %v191_v15 = vadd.f32 %v208_v11, %v181_v13 }
  0xcd   :  { %v192_v16 = vsub.f32 0.0, %v191_v15 }
  0xcf   :  { %v193_v17 = vmul.f32 1.442695, %v192_v16 }
  0xd1   :  { %234 = vpow2.f32 %v193_v17 }
  0xde   :  { %v235_v18 = vpop.eup %234 }
  0xdf   :  { %v195_v19 = vadd.f32 1.0, %v235_v18 }
  0xe1   :  { %236 = vrcp.f32 %v195_v19 }
  0xee   :  { %v237_v20 = vpop.eup %236 }
  0xef   :  { %199 = vst.msk [vmem:[%s302_s5] sm:$0xff] %vm198_vm4, %v237_v20 }

</bundles_post_ra>
